<compile_context>
chip_gen: v5e
topology: v5e:2x2
jax: 0.10.0
libtpu: 0.0.40
codegen_flags: <defaults>
</compile_context>

<pallas_src>
import jax
import jax.numpy as jnp
from jax.experimental import pallas as pl
from jax.experimental.pallas import tpu as pltpu

EPS = 1e-12        # torch.nn.functional.normalize default eps (clamp on the norm)
EPS2 = EPS * EPS   # equivalent clamp on the squared norm (still normal in f32)


def goal_bank_read_kernel(q_ref, gn_ref, gt_ref, o_ref):
    """One query-row tile of the content-based read, lane-dense in the batch.

    q_ref:  (TB, D)  query rows
    gn_ref: (S, D)   row-normalized goal bank (precomputed in the wrapper)
    gt_ref: (D, S)   raw goal bank, transposed (precomputed in the wrapper)
    o_ref:  (D, TB)  g^T output tile (batch on the lane axis -> unmasked store)
    """
    q = q_ref[...]
    if q.dtype != jnp.float32:
        q = q.astype(jnp.float32)
    gn = gn_ref[...]                                   # (S, D) f32
    gt = gt_ref[...]                                   # (D, S) f32

    # L2-normalize the query rows.  Clamping the *squared* norm at EPS^2
    # reproduces F.normalize's clamp_min(EPS) on the norm; rsqrt runs on the
    # EUP.  This O(TB*D) work stays in the (TB, D) orientation (D = 16 lanes),
    # which is tiny compared with the softmax below.
    q_sq = jnp.sum(q * q, axis=-1, keepdims=True)                      # (TB, 1)
    qn = q * jax.lax.rsqrt(jnp.maximum(q_sq, EPS2))                    # (TB, D)

    # simT[s, b] = Gn[s, :] . qn[b, :]  ==  Gn @ qn^T on the MXU.  Contracting
    # the last dims of both operands means no transposed copy is materialized,
    # and the result is lane-dense in the batch.
    simT = jax.lax.dot_general(
        gn, qn, (((1,), (1,)), ((), ())),
        preferred_element_type=jnp.float32)                            # (S, TB)

    # Softmax over the slot (sublane) axis.  simT is a true cosine in [-1, 1]
    # after the f32 normalization, so exp cannot overflow and the
    # max-subtraction is skipped.  Exact divide for the denominator (the
    # approximate EUP reciprocal previously broke 1e-3 parity).
    e = jnp.exp(simT)                                                  # (S, TB)
    w = e * (1.0 / jnp.sum(e, axis=0, keepdims=True))                  # (S, TB)

    # gT[d, b] = sum_s G[s, d] * w[s, b]  ==  G^T @ w; G^T was prebuilt in the
    # wrapper so no in-kernel transpose is needed.  Output stays lane-dense.
    gT = jnp.dot(gt, w, preferred_element_type=jnp.float32)            # (D, TB)
    o_ref[...] = gT.astype(o_ref.dtype)


def _read_xla(query, G):
    """Plain-XLA fallback for tiny batches (pallas launch overhead >> work)."""
    qf = query.astype(jnp.float32)
    Gf = G.astype(jnp.float32)
    qn = qf * jax.lax.rsqrt(jnp.maximum(jnp.sum(qf * qf, -1, keepdims=True), EPS2))
    Gn = Gf * jax.lax.rsqrt(jnp.maximum(jnp.sum(Gf * Gf, -1, keepdims=True), EPS2))
    sim = qn @ Gn.T
    w = jax.nn.softmax(sim, axis=-1)
    return (w @ Gf).astype(query.dtype)


def _auto_block_rows(B, D, itemsize):
    """Largest query-row tile (one block if possible) whose double-buffered
    pipeline footprint (lane-padded q tile + gT tile) stays comfortably inside
    v5e's 16 MiB scoped-VMEM default.  For realistic batches at D = 16 this
    returns B: per-step overhead, not VMEM, is the binding constraint."""
    row_bytes = (max(D, 128) + D) * itemsize   # q row is lane-padded to 128 in VMEM
    max_rows = (4 << 20) // row_bytes
    if B <= max_rows:
        return B
    cand = (max_rows // 128) * 128
    while cand >= 128 and B % cand:
        cand -= 128
    return cand if cand >= 128 else B


def goal_latent_bank_forward(query, G, gamma, *, block_b=None, use_pallas=None):
    """Pallas forward for GoalLatentBank.

    query: (B, D); G: (S, D); gamma: (S,).
    Returns (g: (B, D), normalized_gamma: (S,)).
    """
    B, D = query.shape
    S = G.shape[0]

    # normalized_gamma is query-independent and 16 elements -> plain XLA.
    normalized_gamma = jax.nn.softmax(
        gamma.astype(jnp.float32), axis=0).astype(gamma.dtype)

    # Tiny-batch gate: the kernel only pays off for large B (or when fused).
    if use_pallas is None:
        use_pallas = B >= 256
    if not use_pallas:
        return _read_xla(query, G), normalized_gamma

    # Hoisted, query-independent prep (plain XLA, runs once per call):
    # row-normalized bank for the similarity and the bank transpose for the
    # lane-dense readout matmul.
    Gf = G.astype(jnp.float32)
    Gn = Gf * jax.lax.rsqrt(jnp.maximum(jnp.sum(Gf * Gf, -1, keepdims=True), EPS2))
    GT = Gf.T                                                           # (D, S)

    # Single block by default.  A multi-block grid is only used when the
    # caller asks for a 128-multiple row tile that divides B (needed so the
    # lane-dense output block keeps last dim % 128 == 0), or when auto-tiling
    # kicks in for extremely large B.
    if block_b is None:
        block_b = _auto_block_rows(B, D, query.dtype.itemsize)
    if block_b >= B or B % block_b != 0 or block_b % 128 != 0:
        block_b = B
    grid = (B // block_b,)

    gT = pl.pallas_call(
        goal_bank_read_kernel,
        out_shape=jax.ShapeDtypeStruct((D, B), query.dtype),
        grid=grid,
        in_specs=[
            pl.BlockSpec((block_b, D), lambda i: (i, 0)),   # query row tile
            # Grid-invariant blocks (index_map -> (0, 0)): Pallas skips the
            # re-fetch when the block index is unchanged between steps.
            pl.BlockSpec((S, D), lambda i: (0, 0)),         # Gn (normalized bank)
            pl.BlockSpec((D, S), lambda i: (0, 0)),         # G^T (raw bank)
        ],
        out_specs=pl.BlockSpec((D, block_b), lambda i: (0, i)),   # lane-dense gT
        compiler_params=pltpu.CompilerParams(
            dimension_semantics=("parallel",)),
    )(query, Gn, GT)

    # Back to the module's (B, D) layout in plain XLA.
    return gT.T, normalized_gamma


def _reference(query, G, gamma):
    qn = query / jnp.maximum(jnp.linalg.norm(query, axis=-1, keepdims=True), EPS)
    Gn = G / jnp.maximum(jnp.linalg.norm(G, axis=-1, keepdims=True), EPS)
    sim = jnp.dot(qn, Gn.T, precision=jax.lax.Precision.HIGHEST)
    w = jax.nn.softmax(sim, axis=-1)
    g = jnp.dot(w, G, precision=jax.lax.Precision.HIGHEST)
    return g, jax.nn.softmax(gamma, axis=0)


if __name__ == "__main__":
    num_slots, goal_dim, batch = 16, 16, 4

    key = jax.random.PRNGKey(0)
    k_q, k_g, k_gamma, k_qbig = jax.random.split(key, 4)

    # Module __init__ zero-inits the parameters; use random values so the
    # forward pass is non-degenerate.
    query = jax.random.normal(k_q, (batch, goal_dim), dtype=jnp.float32)
    G = jax.random.normal(k_g, (num_slots, goal_dim), dtype=jnp.float32)
    gamma = jax.random.normal(k_gamma, (num_slots,), dtype=jnp.float32)

    # --- typical module shape (B=4).  Force the Pallas path to validate the
    #     kernel; the default auto-gate would route this to plain XLA. ---
    g, gnorm = goal_latent_bank_forward(query, G, gamma, use_pallas=True)
    jax.block_until_ready((g, gnorm))
    g_ref, gnorm_ref = _reference(query, G, gamma)
    assert g.shape == (batch, goal_dim)
    assert jnp.allclose(g, g_ref, atol=2e-3, rtol=1e-3), "g mismatch vs reference (small batch)"
    assert jnp.allclose(gnorm, gnorm_ref, atol=1e-6), "gamma mismatch vs reference"

    # --- batched call: single lane-dense block (the perf default) ---
    big_batch = 512
    query_big = jax.random.normal(k_qbig, (big_batch, goal_dim), dtype=jnp.float32)
    g_big, _ = goal_latent_bank_forward(query_big, G, gamma)
    jax.block_until_ready(g_big)
    g_big_ref, _ = _reference(query_big, G, gamma)
    assert jnp.allclose(g_big, g_big_ref, atol=2e-3, rtol=1e-3), "g mismatch vs reference (batched)"

    # --- explicit multi-block grid, only to validate the index maps; the
    #     perf default remains the single block above. ---
    g_tiled, _ = goal_latent_bank_forward(query_big, G, gamma, block_b=128)
    jax.block_until_ready(g_tiled)
    assert jnp.allclose(g_tiled, g_big_ref, atol=2e-3, rtol=1e-3), "g mismatch vs reference (tiled)"

    print("KERNEL_OK")
</pallas_src>

<mosaic_0001>
module attributes {stable_mosaic.version = 11 : i64} {
  func.func @goal_bank_read_kernel(%arg0: i32, %arg1: memref<4x16xf32, #tpu.memory_space<vmem>>, %arg2: memref<16x16xf32, #tpu.memory_space<vmem>>, %arg3: memref<16x16xf32, #tpu.memory_space<vmem>>, %arg4: memref<16x4xf32, #tpu.memory_space<vmem>>) attributes {dimension_semantics = [#tpu.dimension_semantics<parallel>], iteration_bounds = array<i64: 1>, scalar_prefetch = 0 : i64, scratch_operands = 0 : i64, tpu.core_type = #tpu.core_type<tc>, window_params = [{transform_indices = @transform_0, window_bounds = array<i64: 4, 16>}, {pipeline_mode = #tpu.pipeline_mode<synchronous>, transform_indices = @transform_1, window_bounds = array<i64: 16, 16>}, {pipeline_mode = #tpu.pipeline_mode<synchronous>, transform_indices = @transform_2, window_bounds = array<i64: 16, 16>}, {transform_indices = @transform_3, window_bounds = array<i64: 16, 4>}]} {
    %c0 = arith.constant 0 : index
    %c0_0 = arith.constant 0 : index
    %0 = vector.load %arg1[%c0, %c0_0] : memref<4x16xf32, #tpu.memory_space<vmem>>, vector<4x16xf32>
    %c0_1 = arith.constant 0 : index
    %c0_2 = arith.constant 0 : index
    %1 = vector.load %arg2[%c0_1, %c0_2] : memref<16x16xf32, #tpu.memory_space<vmem>>, vector<16x16xf32>
    %c0_3 = arith.constant 0 : index
    %c0_4 = arith.constant 0 : index
    %2 = vector.load %arg3[%c0_3, %c0_4] : memref<16x16xf32, #tpu.memory_space<vmem>>, vector<16x16xf32>
    %3 = arith.mulf %0, %0 : vector<4x16xf32>
    %cst = arith.constant dense<0.000000e+00> : vector<4xf32>
    %4 = vector.multi_reduction <add>, %3, %cst [1] : vector<4x16xf32> to vector<4xf32>
    %5 = vector.shape_cast %4 : vector<4xf32> to vector<4x1xf32>
    %cst_5 = arith.constant 1.000000e-24 : f32
    %6 = vector.broadcast %cst_5 : f32 to vector<4x1xf32>
    %7 = arith.maximumf %5, %6 : vector<4x1xf32>
    %8 = math.rsqrt %7 : vector<4x1xf32>
    %9 = vector.broadcast %8 : vector<4x1xf32> to vector<4x16xf32>
    %10 = arith.mulf %0, %9 : vector<4x16xf32>
    %cst_6 = arith.constant dense<0.000000e+00> : vector<16x4xf32>
    %11 = tpu.matmul %1, %10, %cst_6 {dimension_numbers = #tpu.dot_dimension_numbers<[1], [1], [0], [0], [0, 0, 1, 0], [], []>} : vector<16x16xf32>, vector<4x16xf32>, vector<16x4xf32> -> vector<16x4xf32>
    %12 = math.exp %11 : vector<16x4xf32>
    %cst_7 = arith.constant dense<0.000000e+00> : vector<4xf32>
    %13 = vector.multi_reduction <add>, %12, %cst_7 [0] : vector<16x4xf32> to vector<4xf32>
    %14 = vector.shape_cast %13 : vector<4xf32> to vector<1x4xf32>
    %cst_8 = arith.constant 1.000000e+00 : f32
    %15 = vector.broadcast %cst_8 : f32 to vector<1x4xf32>
    %16 = arith.divf %15, %14 : vector<1x4xf32>
    %17 = vector.broadcast %16 : vector<1x4xf32> to vector<16x4xf32>
    %18 = arith.mulf %12, %17 : vector<16x4xf32>
    %cst_9 = arith.constant dense<0.000000e+00> : vector<16x4xf32>
    %19 = tpu.matmul %2, %18, %cst_9 {dimension_numbers = #tpu.dot_dimension_numbers<[1], [0], [0], [1], [0, 0, 1, 1], [], []>} : vector<16x16xf32>, vector<16x4xf32>, vector<16x4xf32> -> vector<16x4xf32>
    %c0_10 = arith.constant 0 : index
    %c0_11 = arith.constant 0 : index
    %20 = vector.load %arg4[%c0_10, %c0_11] : memref<16x4xf32, #tpu.memory_space<vmem>>, vector<16x4xf32>
    tpu.vector_store %arg4[%c0_10, %c0_11], %19 {strides = array<i32>} : memref<16x4xf32, #tpu.memory_space<vmem>>, vector<16x4xf32>,
    return
  }
  func.func @transform_0(%arg0: i32) -> (i32, i32) {
    %c0_i32 = arith.constant 0 : i32
    %c0_i32_0 = arith.constant 0 : i32
    return %arg0, %c0_i32 : i32, i32
  }
  func.func @transform_1(%arg0: i32) -> (i32, i32) {
    %c0_i32 = arith.constant 0 : i32
    %c0_i32_0 = arith.constant 0 : i32
    %c0_i32_1 = arith.constant 0 : i32
    return %c0_i32, %c0_i32_0 : i32, i32
  }
  func.func @transform_2(%arg0: i32) -> (i32, i32) {
    %c0_i32 = arith.constant 0 : i32
    %c0_i32_0 = arith.constant 0 : i32
    %c0_i32_1 = arith.constant 0 : i32
    return %c0_i32, %c0_i32_0 : i32, i32
  }
  func.func @transform_3(%arg0: i32) -> (i32, i32) {
    %c0_i32 = arith.constant 0 : i32
    %c0_i32_0 = arith.constant 0 : i32
    return %c0_i32, %arg0 : i32, i32
  }
}

</mosaic_0001>

<bundles_post_ra>
// kernel: tpu_custom_call.1
= control target key start
LH: loop header
LB: loop body
LE: loop exit
PB: predicated region body
PF: predicated region fallthrough
CT: control target
= control target key end

     0   :  { %8 = vsyncpa [#allocation3], 0  ;;  %s329_s0 = inlined_call_operand.hbm [shape: f32[4,16], index: 0, kind: input, shape index: {}]   ;;  %s330_s1 = inlined_call_operand.hbm [shape: f32[16,16], index: 1, kind: input, shape index: {}]   ;;  %s331_s2 = inlined_call_operand.hbm [shape: f32[16,16], index: 2, kind: input, shape index: {}]   ;;  %s332_s3 = inlined_call_operand.vmem [shape: f32[16,4], index: 3, kind: output, shape index: {}]  }
   0x1   :  { %9 = vsyncpa [#allocation5], 0  ;;  %s25_s14 = sshll.u32 %s330_s1, 4  ;;  %s279_s15 = smov [#allocation4]   ;;  %s26_s14 = int_to_ptr.hbm [resolvable:$true] %s25_s14 }
   0x2   :  { %s27_s16 = sshll.u32 %s279_s15, 4  ;;  %s15_s19 = sshll.u32 %s329_s0, 4  ;;  %s28_s16 = int_to_ptr.vmem [resolvable:$true] %s27_s16  ;;  %s16_s19 = int_to_ptr.hbm [resolvable:$true] %s15_s19 }
   0x3   :  { %s280_s20 = smov 128   ;;  %s281_s21 = smov 8  }
   0x4   :  { %33 = dma.hbm_to_vmem [thread:$0]  %s26_s14, 256, %s28_s16, [#allocation5], %s280_s20, %s280_s20, %s281_s21  }
   0x5   :  { %s282_s22 = smov [#allocation2]   ;;  %s38_s26 = sshll.u32 %s331_s2, 4  ;;  %s39_s26 = int_to_ptr.hbm [resolvable:$true] %s38_s26 }
   0x6   :  { %s17_s23 = sshll.u32 %s282_s22, 4  ;;  %s283_s1 = smov [#allocation6]   ;;  %s18_s23 = int_to_ptr.vmem [resolvable:$true] %s17_s23 }
   0x7   :  { %20 = dma.hbm_to_vmem [thread:$0]  %s16_s19, 64, %s18_s23, [#allocation3]  }
   0x8   :  { %s40_s27 = sshll.u32 %s283_s1, 4  ;;  %s41_s27 = int_to_ptr.vmem [resolvable:$true] %s40_s27 }
   0x9   :  { %46 = dma.hbm_to_vmem [thread:$0]  %s39_s26, 256, %s41_s27, [#allocation5], %s280_s20, %s280_s20, %s281_s21  }
   0xa   :  { %275 = dma.done.wait [#allocation3], 64  }
   0xb   :  { %276 = vsyncadd [#allocation3], 4294967232 }
   0xc   :  { %277 = dma.done.wait [#allocation5], 512  }
   0xd   :  { %278 = vsyncadd [#allocation5], 4294966784  ;;  %v59_v0 = vld [vmem:[#allocation2] sm:$0xf]  ;;  %vm65_vm0 = vcmask 125952   ;;  %vm81_vm4 = vcmask 130048  }
   0xe   :  { %v64_v1 = vmul.f32 %v59_v0, %v59_v0  ;;  %v61_v13 = vld [vmem:[#allocation4 + $0x8] sm:$0xff]  ;;  %v60_v14 = vld [vmem:[#allocation4] sm:$0xff]  ;;  %vm118_vm5 = vcmask 31744   ;;  %v63_v42 = vld [vmem:[#allocation6 + $0x8] sm:$0xff] }
   0xf   :  { %v62_v43 = vld [vmem:[#allocation6] sm:$0xff] }
  0x10   :  { %v66_v2 = vsel %vm65_vm0, %v64_v1, 0.0 }
  0x11   :  { %67 = vadd.xlane.f32.xlu0 %v66_v2 }
  0x84   :  { %v68_v3 = vpop.xlane.xlu0 %67 }
  0x85   :  { %v69_v4 = vmax.f32 %v68_v3, 1e-24 }
  0x87   :  { %195 = vrsqrt.f32 %v69_v4  ;;  %vm76_vm2 = vweird.f32 %v69_v4 }
  0x8d   :  { %v196_v5 = vpop.eup %195 }
  0x8e   :  { %v71_v6 = vmul.f32 %v196_v5, %v69_v4  ;;  %vm77_vm1 = vweird.f32 %v196_v5 }
  0x8f   :  { %vm78_vm3 = vmor %vm76_vm2, %vm77_vm1 }
  0x90   :  { %v72_v7 = vmul.f32 %v196_v5, %v71_v6 }
  0x92   :  { %v73_v8 = vmul.f32 0.5, %v72_v7 }
  0x94   :  { %v74_v9 = vsub.f32 1.5, %v73_v8 }
  0x96   :  { %v75_v10 = vmul.f32 %v196_v5, %v74_v9 }
  0x98   :  { %v79_v11 = vsel %vm78_vm3, %v196_v5, %v75_v10 }
  0x99   :  { %v80_v12 = vmul.f32 %v79_v11, %v59_v0 }
  0x9b   :  { %182 = vmatpush.xpose.msk.msra.mxu0 %vm81_vm4, %v80_v12  ;;  %187 = vmatpush.xpose.msk.msra.mxu2 %vm81_vm4, %v80_v12 }
  0x9e   :  { %184 = vmatmul.msk.f32.vlgmr.msra.gmra.mxu2 %vm81_vm4, %v61_v13  ;;  %183 = vmatmul.msk.f32.vlgmr.msra.gmra.mxu0 %vm81_vm4, %v60_v14 }
 0x11b   :  { %v108_v15 = vpop.f32.mrf.mxu0 }
 0x11c   :  { %v114_v16 = vmul.f32 1.442695, %v108_v15 }
 0x11e   :  { %197 = vpow2.f32 %v114_v16 }
 0x121   :  { %v111_v17 = vpop.f32.mrf.mxu2 }
 0x122   :  { %v116_v18 = vmul.f32 1.442695, %v111_v17 }
 0x124   :  { %199 = vpow2.f32 %v116_v18  ;;  %v198_v19 = vpop.eup %197 }
 0x125   :  { %v119_v20 = vsel %vm118_vm5, %v198_v19, 0.0 }
 0x12a   :  { %v200_v21 = vpop.eup %199 }
 0x12b   :  { %v120_v22 = vsel %vm118_vm5, %v200_v21, 0.0 }
 0x12c   :  { %v121_v23 = vadd.f32 %v120_v22, %v119_v20 }
 0x12e   :  { %v122_v24 = vrot.slane %v121_v23, 4 }
 0x130   :  { %v123_v25 = vadd.f32 %v122_v24, %v121_v23 }
 0x132   :  { %v124_v26 = vrot.slane %v123_v25, 2 }
 0x134   :  { %v125_v27 = vadd.f32 %v124_v26, %v123_v25 }
 0x136   :  { %v126_v28 = vrot.slane %v125_v27, 1 }
 0x138   :  { %v127_v29 = vadd.f32 %v126_v28, %v125_v27 }
 0x13a   :  { %201 = vrcp.f32 %v127_v29  ;;  %v139_v33 = vand.u32 2147483648, %v127_v29  ;;  %v137_v35 = vand.u32 2147483647, %v127_v29  ;;  %vm133_vm7 = vweird.f32 %v127_v29 }
 0x13c   :  { %v140_v37 = vor.u32 1.1754944e-38, %v139_v33  ;;  %vm138_vm9 = vcmp.eq.f32.partialorder %v137_v35, 8.507059e+37 }
 0x140   :  { %v202_v30 = vpop.eup %201 }
 0x141   :  { %v129_v31 = vmul.f32 %v202_v30, %v127_v29  ;;  %vm134_vm6 = vweird.f32 %v202_v30 }
 0x142   :  { %vm135_vm8 = vmor %vm133_vm7, %vm134_vm6 }
 0x143   :  { %v130_v32 = vsub.f32 1.0, %v129_v31 }
 0x145   :  { %v131_v34 = vmul.f32 %v202_v30, %v130_v32 }
 0x147   :  { %v132_v36 = vadd.f32 %v202_v30, %v131_v34 }
 0x149   :  { %v136_v38 = vsel %vm135_vm8, %v202_v30, %v132_v36 }
 0x14a   :  { %v141_v39 = vsel %vm138_vm9, %v140_v37, %v136_v38 }
 0x14b   :  { %v144_v40 = vmul.f32 %v200_v21, %v141_v39  ;;  %v143_v41 = vmul.f32 %v198_v19, %v141_v39 }
 0x14d   :  { %165 = vmatpush.msra.mxu1 %v144_v40  ;;  %188 = vmatpush.msra.mxu3 %v144_v40 }
 0x14f   :  { %166 = vmatpush.msra.mxu1 %v143_v41  ;;  %189 = vmatpush.msra.mxu3 %v143_v41 }
 0x150   :  { %186 = vmatmul.msk.f32.vlgmr.msra.gmra.mxu3 %vm81_vm4, %v63_v42  ;;  %185 = vmatmul.msk.f32.vlgmr.msra.gmra.mxu1 %vm81_vm4, %v62_v43 }
 0x1cd   :  { %v168_v44 = vpop.f32.mrf.mxu1 }
 0x1ce   :  { %174 = vst.msk [vmem:[%s332_s3] sm:$0xff] %vm118_vm5, %v168_v44 }
 0x1d3   :  { %v171_v45 = vpop.f32.mrf.mxu3 }
 0x1d4   :  { %175 = vst.msk [vmem:[%s332_s3 + $0x8] sm:$0xff] %vm118_vm5, %v171_v45 }
 0x1d5   :  { %180 = vsyncpa [#allocation3], 1 }
 0x1d6   :  { %181 = vsyncpa [#allocation5], 1 }

</bundles_post_ra>
